<compile_context>
chip_gen: v5e
topology: v5e:2x2
jax: 0.10.0
libtpu: 0.0.40
codegen_flags: <defaults>
</compile_context>

<pallas_src>
import functools

import numpy as np
import jax
import jax.numpy as jnp
from jax.experimental import pallas as pl
from jax.experimental.pallas import tpu as pltpu


# ----------------------------------------------------------------------------
# Static full-space (2^n x 2^n) gate operators (column-vector convention).
# Used by the wrapper (operator folding) and the numpy reference.
# ----------------------------------------------------------------------------
def _full_x(q, n):
    d = 2 ** n
    m = np.zeros((d, d), np.float32)
    for k in range(d):
        m[k ^ (1 << q), k] = 1.0
    return m                      # symmetric


def _full_miy(q, n):              # (-i * Y) on qubit q : |0> -> |1>, |1> -> -|0>
    d = 2 ** n
    m = np.zeros((d, d), np.float32)
    for k in range(d):
        if (k >> q) & 1 == 0:
            m[k | (1 << q), k] = 1.0
        else:
            m[k & ~(1 << q), k] = -1.0
    return m


def _full_cnot(c, t, n):
    d = 2 ** n
    m = np.zeros((d, d), np.float32)
    for k in range(d):
        j = k ^ (1 << t) if ((k >> c) & 1) else k
        m[j, k] = 1.0
    return m


def _z_weights(n):                # total magnetization weights: n - 2*popcount(k)
    d = 2 ** n
    return np.array([n - 2 * bin(k).count("1") for k in range(d)],
                    np.float32).reshape(1, d)


# ----------------------------------------------------------------------------
# Wrapper-side folding of EVERYTHING static into polynomial coefficients A_r:
#   out(nx) = sum_{r=0..2n} A_r * cos(nx/2)^(2n-r) * sin(nx/2)^r
# theta is runtime, so this uses jnp (tiny 16x16 matmuls, traced once).
# ----------------------------------------------------------------------------
def _fold_to_polynomial(theta, n_qubits):
    D = 2 ** n_qubits
    th = jnp.reshape(theta, (-1,)).astype(jnp.float32)
    eye = jnp.eye(D, dtype=jnp.float32)

    # U = CNOT(2,3) CNOT(1,2) CNOT(0,1) RY_3 RY_2 RY_1 RY_0   (real (D,D))
    u = eye
    for q in range(n_qubits):
        a_q = jnp.asarray(_full_miy(q, n_qubits))   # RY = cos*I + sin*(-iY), real
        u = (jnp.cos(0.5 * th[q]) * eye + jnp.sin(0.5 * th[q]) * a_q) @ u
    for q in range(n_qubits - 1):
        u = jnp.asarray(_full_cnot(q, q + 1, n_qubits)) @ u

    # popcount-dependent data (numpy, compile-time)
    pop = np.array([bin(k).count("1") for k in range(D)], np.int32)
    sign_re = np.array([1.0, 0.0, -1.0, 0.0], np.float32)[pop % 4]   # Re (-i)^p
    sign_im = np.array([0.0, -1.0, 0.0, 1.0], np.float32)[pop % 4]   # Im (-i)^p
    w = (n_qubits - 2 * pop).astype(np.float32)                      # (D,)

    # M = U_R^T diag(w) U_R + U_I^T diag(w) U_I  (real, symmetric)
    u_r = u * jnp.asarray(sign_re)[None, :]          # column scaling
    u_i = u * jnp.asarray(sign_im)[None, :]
    w_col = jnp.asarray(w)[:, None]
    m = u_r.T @ (w_col * u_r) + u_i.T @ (w_col * u_i)

    # Collapse to popcount classes: M5 = P^T M P,  P[k, popcount(k)] = 1
    p_mat = np.zeros((D, n_qubits + 1), np.float32)
    p_mat[np.arange(D), pop] = 1.0
    p_mat = jnp.asarray(p_mat)
    m5 = p_mat.T @ m @ p_mat                         # (n+1, n+1)

    # Polynomial coefficients A_r = sum_{p+q=r} M5[p, q],  r = 0..2n
    degree = 2 * n_qubits
    coef = []
    for r in range(degree + 1):
        lo, hi = max(0, r - n_qubits), min(n_qubits, r)
        c_r = m5[lo, r - lo]
        for p in range(lo + 1, hi + 1):
            c_r = c_r + m5[p, r - p]
        coef.append(c_r)
    return jnp.stack(coef).astype(jnp.float32)       # (2n+1,)


# ----------------------------------------------------------------------------
# Pallas kernel: evaluate the folded polynomial on one lane-dense batch tile.
#   coef_ref : SMEM (degree+1,) f32   (runtime, theta-dependent)
#   nx_ref   : VMEM (1, TB)    f32    (batch on the lane axis)
#   out_ref  : VMEM (1, TB)    f32
# ----------------------------------------------------------------------------
def magnetization_kernel(coef_ref, nx_ref, out_ref, *, degree):
    half = 0.5 * nx_ref[...]                         # (1, TB)
    c = jnp.cos(half)                                # EUP
    s = jnp.sin(half)

    # powers c^k, s^k for k = 1..degree  (pure VPU on (1, TB) rows)
    c_pow = [None, c]
    s_pow = [None, s]
    for k in range(2, degree + 1):
        c_pow.append(c_pow[k - 1] * c)
        s_pow.append(s_pow[k - 1] * s)

    # out = sum_r coef[r] * c^(degree-r) * s^r   (scalar-from-SMEM * vector)
    acc = coef_ref[0] * c_pow[degree]
    for r in range(1, degree):
        acc = acc + coef_ref[r] * (c_pow[degree - r] * s_pow[r])
    acc = acc + coef_ref[degree] * s_pow[degree]

    out_ref[...] = acc                               # lane-dense (1, TB) store


# ----------------------------------------------------------------------------
# Tiling heuristic: the kernel is per-step-overhead bound (KiB-scale traffic),
# so use a single grid step for small batches on all chips; tile only for
# large batches (>= 1024 padded lanes -> >= 2 tiles only beyond 1024, which is
# when a second TensorCore on v7x actually has enough lanes per core).
# ----------------------------------------------------------------------------
def _pick_tile(padded_b):
    if padded_b <= 1024:
        return padded_b
    for cand in (1024, 896, 768, 640, 512, 384, 256, 128):
        if padded_b % cand == 0:
            return cand
    return 128


# ----------------------------------------------------------------------------
# Wrapper
# ----------------------------------------------------------------------------
def test_network_forward(nx, theta, n_qubits=4):
    """nx: (B,) or (B, 1) f32 feature angles; theta: (1, n_qubits) f32 params.
    Returns total magnetization, shape (B,) f32."""
    nx_flat = jnp.reshape(nx, (-1,)).astype(jnp.float32)
    B = nx_flat.shape[0]
    degree = 2 * n_qubits

    # pad batch to a lane-dense multiple of 128 (unmasked stores)
    Bp = ((B + 127) // 128) * 128
    if Bp != B:
        nx_flat = jnp.pad(nx_flat, (0, Bp - B))
    TB = _pick_tile(Bp)

    coef = _fold_to_polynomial(theta, n_qubits)      # (2n+1,) runtime scalars
    nx_row = nx_flat.reshape(1, Bp)                  # batch on the lane axis

    out = pl.pallas_call(
        functools.partial(magnetization_kernel, degree=degree),
        out_shape=jax.ShapeDtypeStruct((1, Bp), jnp.float32),
        grid=(Bp // TB,),
        in_specs=[
            pl.BlockSpec(memory_space=pltpu.MemorySpace.SMEM),  # coefficients
            pl.BlockSpec((1, TB), lambda i: (0, i)),            # nx tile (lanes)
        ],
        out_specs=pl.BlockSpec((1, TB), lambda i: (0, i)),
        compiler_params=pltpu.CompilerParams(dimension_semantics=("parallel",)),
    )(coef, nx_row)
    return out[0, :B]


# ----------------------------------------------------------------------------
# Pure-numpy reference (gate-by-gate, complex128) for validation.
# ----------------------------------------------------------------------------
def _reference(nx, theta, n_qubits):
    nx = np.asarray(nx, np.float64).reshape(-1, 1)
    theta = np.asarray(theta, np.float64).reshape(1, -1)
    B, D = nx.shape[0], 2 ** n_qubits
    psi = np.zeros((B, D), np.complex128)
    psi[:, 0] = 1.0
    for q in range(n_qubits):
        c = np.cos(0.5 * nx)          # (B,1)
        s = np.sin(0.5 * nx)
        X = _full_x(q, n_qubits).astype(np.float64)
        psi = c * psi - 1j * s * (psi @ X.T)
    for q in range(n_qubits):
        c = np.cos(0.5 * theta[0, q])
        s = np.sin(0.5 * theta[0, q])
        A = _full_miy(q, n_qubits).astype(np.float64)
        psi = c * psi + s * (psi @ A.T)
    for q in range(n_qubits - 1):
        C = _full_cnot(q, q + 1, n_qubits).astype(np.float64)
        psi = psi @ C.T
    w = _z_weights(n_qubits).astype(np.float64)
    return np.sum(np.abs(psi) ** 2 * w, axis=1)


if __name__ == "__main__":
    key = jax.random.PRNGKey(0)
    k1, k2 = jax.random.split(key)
    B, n_qubits = 256, 4
    nx = jax.random.uniform(k1, (B, 1), jnp.float32,
                            minval=-jnp.pi, maxval=jnp.pi)
    theta = jax.random.uniform(k2, (1, n_qubits), jnp.float32,
                               minval=-jnp.pi, maxval=jnp.pi)

    out = test_network_forward(nx, theta, n_qubits=n_qubits)
    out = jax.block_until_ready(out)

    ref = _reference(nx, theta, n_qubits)
    np.testing.assert_allclose(np.asarray(out), ref, rtol=1e-4, atol=1e-4)
    print("KERNEL_OK")
</pallas_src>

<mosaic_0001>
module attributes {stable_mosaic.version = 11 : i64} {
  func.func @magnetization_kernel(%arg0: i32, %arg1: memref<9xf32, #tpu.memory_space<smem>>, %arg2: memref<1x256xf32, #tpu.memory_space<vmem>>, %arg3: memref<1x256xf32, #tpu.memory_space<vmem>>) attributes {dimension_semantics = [#tpu.dimension_semantics<parallel>], iteration_bounds = array<i64: 1>, scalar_prefetch = 0 : i64, scratch_operands = 0 : i64, tpu.core_type = #tpu.core_type<tc>, window_params = [{transform_indices = @transform_0, window_bounds = array<i64: 9>}, {transform_indices = @transform_1, window_bounds = array<i64: 1, 256>}, {transform_indices = @transform_2, window_bounds = array<i64: 1, 256>}]} {
    %c0 = arith.constant 0 : index
    %c0_0 = arith.constant 0 : index
    %0 = vector.load %arg2[%c0, %c0_0] : memref<1x256xf32, #tpu.memory_space<vmem>>, vector<1x256xf32>
    %cst = arith.constant 5.000000e-01 : f32
    %1 = vector.broadcast %cst : f32 to vector<1x256xf32>
    %2 = arith.mulf %1, %0 : vector<1x256xf32>
    %3 = math.cos %2 : vector<1x256xf32>
    %4 = math.sin %2 : vector<1x256xf32>
    %5 = arith.mulf %3, %3 : vector<1x256xf32>
    %6 = arith.mulf %4, %4 : vector<1x256xf32>
    %7 = arith.mulf %5, %3 : vector<1x256xf32>
    %8 = arith.mulf %6, %4 : vector<1x256xf32>
    %9 = arith.mulf %7, %3 : vector<1x256xf32>
    %10 = arith.mulf %8, %4 : vector<1x256xf32>
    %11 = arith.mulf %9, %3 : vector<1x256xf32>
    %12 = arith.mulf %10, %4 : vector<1x256xf32>
    %13 = arith.mulf %11, %3 : vector<1x256xf32>
    %14 = arith.mulf %12, %4 : vector<1x256xf32>
    %15 = arith.mulf %13, %3 : vector<1x256xf32>
    %16 = arith.mulf %14, %4 : vector<1x256xf32>
    %17 = arith.mulf %15, %3 : vector<1x256xf32>
    %18 = arith.mulf %16, %4 : vector<1x256xf32>
    %c0_1 = arith.constant 0 : index
    %19 = memref.load %arg1[%c0_1] : memref<9xf32, #tpu.memory_space<smem>>
    %20 = vector.broadcast %19 : f32 to vector<1x256xf32>
    %21 = arith.mulf %20, %17 : vector<1x256xf32>
    %c1 = arith.constant 1 : index
    %22 = memref.load %arg1[%c1] : memref<9xf32, #tpu.memory_space<smem>>
    %23 = arith.mulf %15, %4 : vector<1x256xf32>
    %24 = vector.broadcast %22 : f32 to vector<1x256xf32>
    %25 = arith.mulf %24, %23 : vector<1x256xf32>
    %26 = arith.addf %21, %25 : vector<1x256xf32>
    %c2 = arith.constant 2 : index
    %27 = memref.load %arg1[%c2] : memref<9xf32, #tpu.memory_space<smem>>
    %28 = arith.mulf %13, %6 : vector<1x256xf32>
    %29 = vector.broadcast %27 : f32 to vector<1x256xf32>
    %30 = arith.mulf %29, %28 : vector<1x256xf32>
    %31 = arith.addf %26, %30 : vector<1x256xf32>
    %c3 = arith.constant 3 : index
    %32 = memref.load %arg1[%c3] : memref<9xf32, #tpu.memory_space<smem>>
    %33 = arith.mulf %11, %8 : vector<1x256xf32>
    %34 = vector.broadcast %32 : f32 to vector<1x256xf32>
    %35 = arith.mulf %34, %33 : vector<1x256xf32>
    %36 = arith.addf %31, %35 : vector<1x256xf32>
    %c4 = arith.constant 4 : index
    %37 = memref.load %arg1[%c4] : memref<9xf32, #tpu.memory_space<smem>>
    %38 = arith.mulf %9, %10 : vector<1x256xf32>
    %39 = vector.broadcast %37 : f32 to vector<1x256xf32>
    %40 = arith.mulf %39, %38 : vector<1x256xf32>
    %41 = arith.addf %36, %40 : vector<1x256xf32>
    %c5 = arith.constant 5 : index
    %42 = memref.load %arg1[%c5] : memref<9xf32, #tpu.memory_space<smem>>
    %43 = arith.mulf %7, %12 : vector<1x256xf32>
    %44 = vector.broadcast %42 : f32 to vector<1x256xf32>
    %45 = arith.mulf %44, %43 : vector<1x256xf32>
    %46 = arith.addf %41, %45 : vector<1x256xf32>
    %c6 = arith.constant 6 : index
    %47 = memref.load %arg1[%c6] : memref<9xf32, #tpu.memory_space<smem>>
    %48 = arith.mulf %5, %14 : vector<1x256xf32>
    %49 = vector.broadcast %47 : f32 to vector<1x256xf32>
    %50 = arith.mulf %49, %48 : vector<1x256xf32>
    %51 = arith.addf %46, %50 : vector<1x256xf32>
    %c7 = arith.constant 7 : index
    %52 = memref.load %arg1[%c7] : memref<9xf32, #tpu.memory_space<smem>>
    %53 = arith.mulf %3, %16 : vector<1x256xf32>
    %54 = vector.broadcast %52 : f32 to vector<1x256xf32>
    %55 = arith.mulf %54, %53 : vector<1x256xf32>
    %56 = arith.addf %51, %55 : vector<1x256xf32>
    %c8 = arith.constant 8 : index
    %57 = memref.load %arg1[%c8] : memref<9xf32, #tpu.memory_space<smem>>
    %58 = vector.broadcast %57 : f32 to vector<1x256xf32>
    %59 = arith.mulf %58, %18 : vector<1x256xf32>
    %60 = arith.addf %56, %59 : vector<1x256xf32>
    %c0_2 = arith.constant 0 : index
    %c0_3 = arith.constant 0 : index
    %61 = vector.load %arg3[%c0_2, %c0_3] : memref<1x256xf32, #tpu.memory_space<vmem>>, vector<1x256xf32>
    tpu.vector_store %arg3[%c0_2, %c0_3], %60 {strides = array<i32>} : memref<1x256xf32, #tpu.memory_space<vmem>>, vector<1x256xf32>,
    return
  }
  func.func @transform_0(%arg0: i32) -> i32 {
    %c0_i32 = arith.constant 0 : i32
    %c0_i32_0 = arith.constant 0 : i32
    return %c0_i32 : i32
  }
  func.func @transform_1(%arg0: i32) -> (i32, i32) {
    %c0_i32 = arith.constant 0 : i32
    %c0_i32_0 = arith.constant 0 : i32
    return %c0_i32, %arg0 : i32, i32
  }
  func.func @transform_2(%arg0: i32) -> (i32, i32) {
    %c0_i32 = arith.constant 0 : i32
    %c0_i32_0 = arith.constant 0 : i32
    return %c0_i32, %arg0 : i32, i32
  }
}

</mosaic_0001>

<bundles_post_ra>
// kernel: tpu_custom_call.1
= control target key start
LH: loop header
LB: loop body
LE: loop exit
PB: predicated region body
PF: predicated region fallthrough
CT: control target
= control target key end

     0   :  { %7 = vsyncpa [#allocation5], 0  ;;  %s599_s0 = inlined_call_operand.hbm [shape: f32[9], index: 0, kind: input, shape index: {}]   ;;  %s600_s1 = inlined_call_operand.hbm [shape: f32[1,256], index: 1, kind: input, shape index: {}]   ;;  %s601_s2 = inlined_call_operand.hbm [shape: f32[1,256], index: 2, kind: output, shape index: {}]  }
   0x1   :  { %8 = vsyncpa [#allocation3], 0 }
   0x2   :  { %9 = vsyncpa [#allocation4], 0  ;;  %s15_s11 = sshll.u32 %s599_s0, 4  ;;  %s24_s14 = sshll.u32 %s600_s1, 4  ;;  %s16_s11 = int_to_ptr.hbm [resolvable:$true] %s15_s11  ;;  %s25_s14 = int_to_ptr.hbm [resolvable:$true] %s24_s14 }
   0x3   :  { %s519_s15 = smov [#allocation2]   ;;  %s520_s16 = smov [#allocation6]  }
   0x4   :  { %18 = dma.hbm_to_smem %s16_s11, 16, %s519_s15, [#allocation5]  }
   0x5   :  { %s26_s17 = sshll.u32 %s520_s16, 4  ;;  %s27_s17 = int_to_ptr.vmem [resolvable:$true] %s26_s17 }
   0x6   :  { %29 = dma.hbm_to_vmem [thread:$0]  %s25_s14, 32, %s27_s17, [#allocation3]  }
   0x7   :  { %513 = dma.done.wait [#allocation5], 16  }
   0x8   :  { %514 = vsyncadd [#allocation5], 4294967280 }
   0x9   :  { %515 = dma.done.wait [#allocation3], 32  }
   0xa   :  { %516 = vsyncadd [#allocation3], 4294967264 }
   0xb   :  { %38 = sfence }
   0xc   :  { %v39_v0 = vld [vmem:[#allocation6] sm:$0x3]  ;;  %v521_v13 = vmov 683565275   ;;  %v522_v15 = vmov 2475754826  }
   0xd   :  { %v550_v1 = vmul.f32 0.5, %v39_v0  ;;  %v523_v17 = vmov 2131351028   ;;  %v524_v19 = vmov 2102212464   ;;  %s364_s0 = sld [smem:[#allocation2]] }
   0xe   :  { %v525_v21 = vmov 920167782   ;;  %v526_v27 = vmov 1326507024   ;;  %s435_s1 = sld [smem:[#allocation2 + $0x1]]  ;;  %s528_s25 = smov [#allocation7]  }
   0xf   :  { %v44_v2 = vand.u32 2139095040, %v550_v1  ;;  %v41_v4 = vand.u32 2147483647, %v550_v1  ;;  %vm43_vm12 = vcmp.lt.s32.totalorder %v550_v1, 0  ;;  %s436_s18 = sld [smem:[#allocation2 + $0x2]]  ;;  %s416_s26 = sshll.u32 %s528_s25, 4  ;;  %s417_s26 = int_to_ptr.vmem [resolvable:$true] %s416_s26 }
  0x10   :  { %s437_s19 = sld [smem:[#allocation2 + $0x3]]  ;;  %s418_s29 = sshll.u32 %s601_s2, 4  ;;  %s419_s29 = int_to_ptr.hbm [resolvable:$true] %s418_s29 }
  0x11   :  { %v45_v3 = vshrl.u32 %v44_v2, 23  ;;  %v48_v7 = vand.u32 8388607, %v41_v4  ;;  %v527_v2 = vmov 0   ;;  %vm42_vm13 = vcmp.le.f32.partialorder %v41_v4, 0.7853982 }
  0x12   :  { %s438_s20 = sld [smem:[#allocation2 + $0x4]] }
  0x13   :  { %v429_v5 = vadd.s32 4294967169, %v45_v3  ;;  %v49_v10 = vor.u32 8388608, %v48_v7  ;;  %s439_s21 = sld [smem:[#allocation2 + $0x5]] }
  0x14   :  { %s440_s22 = sld [smem:[#allocation2 + $0x6]] }
  0x15   :  { %v51_v6 = vadd.s32 1, %v429_v5  ;;  %v559_v29 = vshll.u32 %v49_v10, 8  ;;  %s441_s23 = sld [smem:[#allocation2 + $0x7]] }
  0x16   :  { %s442_s24 = sld [smem:[#allocation2 + $0x8]] }
  0x17   :  { %vm52_vm0 = vcmp.gt.s32.totalorder %v51_v6, 0  ;;  %v90_v41 = vand.u32 65535, %v559_v29  ;;  %v91_v42 = vshrl.u32 %v559_v29, 16 }
  0x18   :  { %v53_v8 = vsel %vm52_vm0, %v51_v6, 0 }
  0x19   :  { %v55_v9 = vand.u32 31, %v53_v8  ;;  %v556_v11 = vshrl.u32 %v53_v8, 5 }
  0x1b   :  { %v56_v12 = vsub.s32 32, %v55_v9  ;;  %v58_v14 = vshll.u32 %v521_v13, %v55_v9  ;;  %v61_v16 = vshll.u32 %v522_v15, %v55_v9  ;;  %v64_v18 = vshll.u32 %v523_v17, %v55_v9 }
  0x1c   :  { %v67_v20 = vshll.u32 %v524_v19, %v55_v9  ;;  %v70_v22 = vshll.u32 %v525_v21, %v55_v9  ;;  %vm73_vm1 = vcmp.lt.s32.totalorder %v556_v11, 1  ;;  %vm76_vm2 = vcmp.lt.s32.totalorder %v556_v11, 4 }
  0x1d   :  { %v59_v23 = vshrl.u32 %v522_v15, %v56_v12  ;;  %v62_v24 = vshrl.u32 %v523_v17, %v56_v12  ;;  %v65_v25 = vshrl.u32 %v524_v19, %v56_v12  ;;  %v68_v26 = vshrl.u32 %v525_v21, %v56_v12 }
  0x1e   :  { %v71_v28 = vshrl.u32 %v526_v27, %v56_v12  ;;  %vm75_vm3 = vcmp.lt.s32.totalorder %v556_v11, 3  ;;  %vm74_vm4 = vcmp.lt.s32.totalorder %v556_v11, 2  ;;  %v57_v49 = vshrl.u32 %v521_v13, %v56_v12 }
  0x1f   :  { %v60_v30 = vor.u32 %v59_v23, %v58_v14  ;;  %v63_v31 = vor.u32 %v62_v24, %v61_v16  ;;  %v66_v32 = vor.u32 %v65_v25, %v64_v18  ;;  %v69_v33 = vor.u32 %v68_v26, %v67_v20 }
  0x20   :  { %v72_v34 = vor.u32 %v71_v28, %v70_v22 }
  0x21   :  { %v81_v35 = vsel %vm73_vm1, %v60_v30, %v63_v31  ;;  %v85_v36 = vsel %vm73_vm1, %v63_v31, %v66_v32  ;;  %v82_v37 = vsel %vm76_vm2, %v69_v33, 920167782  ;;  %v77_v62 = vsel %vm73_vm1, %v57_v49, %v60_v30 }
  0x22   :  { %v86_v38 = vsel %vm76_vm2, %v72_v34, 1326507024  ;;  %v83_v39 = vsel %vm75_vm3, %v66_v32, %v82_v37  ;;  %v78_v0 = vsel %vm76_vm2, %v66_v32, 2102212464 }
  0x23   :  { %v87_v40 = vsel %vm75_vm3, %v69_v33, %v86_v38  ;;  %v84_v43 = vsel %vm74_vm4, %v81_v35, %v83_v39  ;;  %v79_v13 = vsel %vm75_vm3, %v63_v31, %v78_v0 }
  0x24   :  { %v88_v44 = vsel %vm74_vm4, %v85_v36, %v87_v40  ;;  %v114_v47 = vand.u32 65535, %v84_v43  ;;  %v115_v48 = vshrl.u32 %v84_v43, 16  ;;  %v80_v21 = vsel %vm74_vm4, %v77_v62, %v79_v13 }
  0x25   :  { %v92_v45 = vand.u32 65535, %v88_v44  ;;  %v93_v46 = vshrl.u32 %v88_v44, 16  ;;  %v134_v25 = vmul.u32 %v559_v29, %v80_v21  ;;  %vm184_vm4 = vweird.f32 %v550_v1 }
  0x26   :  { %v116_v53 = vmul.u32 %v114_v47, %v90_v41  ;;  %v117_v54 = vmul.u32 %v115_v48, %v90_v41  ;;  %v118_v55 = vmul.u32 %v114_v47, %v91_v42  ;;  %v119_v59 = vmul.u32 %v115_v48, %v91_v42 }
  0x27   :  { %v94_v50 = vmul.u32 %v92_v45, %v90_v41  ;;  %v95_v51 = vmul.u32 %v93_v46, %v90_v41  ;;  %v96_v52 = vmul.u32 %v92_v45, %v91_v42  ;;  %v97_v56 = vmul.u32 %v93_v46, %v91_v42 }
  0x28   :  { %v120_v60 = vshll.u32 %v117_v54, 16  ;;  %v122_v61 = vshll.u32 %v118_v55, 16  ;;  %v121_v10 = vshrl.u32 %v117_v54, 16  ;;  %v123_v17 = vshrl.u32 %v118_v55, 16 }
  0x29   :  { %v98_v57 = vshll.u32 %v95_v51, 16  ;;  %v100_v58 = vshll.u32 %v96_v52, 16  ;;  %v99_v6 = vshrl.u32 %v95_v51, 16  ;;  %v101_v14 = vshrl.u32 %v96_v52, 16 }
  0x2a   :  { %vm124_vm6 = vc.u32 %v116_v53, %v120_v60  ;;  %v126_v5 = vadd.s32 %v120_v60, %v116_v53 }
  0x2b   :  { %vm102_vm5 = vc.u32 %v94_v50, %v98_v57  ;;  %v104_v63 = vadd.s32 %v98_v57, %v94_v50  ;;  %v125_v8 = vsel %vm124_vm6, 1, %v527_v2 }
  0x2c   :  { %v103_v3 = vsel %vm102_vm5, 1, %v527_v2  ;;  %v127_v12 = vadd.s32 %v125_v8, %v119_v59  ;;  %vm128_vm8 = vc.u32 %v126_v5, %v122_v61  ;;  %v130_v20 = vadd.s32 %v126_v5, %v122_v61 }
  0x2d   :  { %v105_v7 = vadd.s32 %v103_v3, %v97_v56  ;;  %vm106_vm7 = vc.u32 %v104_v63, %v100_v58  ;;  %v129_v16 = vsel %vm128_vm8, 1, %v527_v2 }
  0x2e   :  { %v107_v9 = vsel %vm106_vm7, 1, %v527_v2  ;;  %v131_v18 = vadd.s32 %v129_v16, %v127_v12 }
  0x2f   :  { %v109_v15 = vadd.s32 %v107_v9, %v105_v7 }
  0x30   :  { %v132_v22 = vadd.s32 %v131_v18, %v121_v10 }
  0x31   :  { %v110_v19 = vadd.s32 %v109_v15, %v99_v6 }
  0x32   :  { %v133_v24 = vadd.s32 %v132_v22, %v123_v17 }
  0x33   :  { %v111_v23 = vadd.s32 %v110_v19, %v101_v14 }
  0x34   :  { %v137_v26 = vadd.s32 1, %v133_v24 }
  0x35   :  { %vm136_vm9 = vc.u32 %v111_v23, %v130_v20  ;;  %v135_v11 = vadd.s32 %v130_v20, %v111_v23 }
  0x36   :  { %v138_v27 = vsel %vm136_vm9, %v137_v26, %v133_v24 }
  0x37   :  { %v139_v28 = vadd.s32 %v138_v27, %v134_v25 }
  0x39   :  { %v140_v30 = vadd.s32 536870912, %v139_v28 }
  0x3b   :  { %v141_v31 = vshrl.u32 %v140_v30, 30 }
  0x3d   :  { %v142_v32 = vshll.u32 %v141_v31, 30  ;;  %v165_v50 = vsub.s32 4, %v141_v31 }
  0x3f   :  { %v143_v33 = vsub.s32 %v139_v28, %v142_v32  ;;  %v166_v54 = vsel %vm43_vm12, %v165_v50, %v141_v31  ;;  %v365_v31 = vstv %s364_s0  ;;  %v369_v32 = vstv %s435_s1 }
  0x40   :  { %v168_v57 = vsel %vm42_vm13, 0, %v166_v54  ;;  %v394_v50 = vstv %s440_s22  ;;  %v399_v54 = vstv %s441_s23 }
  0x41   :  { %vm144_vm10 = vcmp.lt.s32.totalorder %v143_v33, 0  ;;  %v145_v34 = vsub.s32 0, %v143_v33  ;;  %v339_v60 = vadd.s32 3, %v168_v57  ;;  %v185_v2 = vand.u32 3, %v168_v57 }
  0x43   :  { %v146_v35 = vsel %vm144_vm10, %v145_v34, %v143_v33  ;;  %v340_v3 = vand.u32 3, %v339_v60  ;;  %vm190_vm14 = vcmp.eq.s32.totalorder %v185_v2, 2  ;;  %vm186_vm0 = vcmp.lt.s32.totalorder %v185_v2, 2 }
  0x44   :  { %v147_v36 = vclz %v146_v35  ;;  %vm187_vm1 = vcmp.eq.s32.totalorder %v185_v2, 0 }
  0x45   :  { %vm345_vm15 = vcmp.eq.s32.totalorder %v340_v3, 2  ;;  %vm342_vm2 = vcmp.eq.s32.totalorder %v340_v3, 0  ;;  %vm341_vm3 = vcmp.lt.s32.totalorder %v340_v3, 2 }
  0x46   :  { %v430_v37 = vadd.s32 4294967294, %v147_v36 }
  0x48   :  { %vm431_vm11 = vcmp.lt.s32.totalorder %v430_v37, 0 }
  0x49   :  { %v150_v38 = vsel %vm431_vm11, 0, %v430_v37 }
  0x4a   :  { %v151_v39 = vsub.s32 32, %v150_v38  ;;  %v152_v40 = vshll.u32 %v143_v33, %v150_v38  ;;  %v155_v41 = vsub.s32 4294967266, %v150_v38  ;;  %v374_v33 = vstv %s436_s18 }
  0x4c   :  { %v153_v29 = vshrl.u32 %v135_v11, %v151_v39  ;;  %v156_v42 = vadd.s32 127, %v155_v41  ;;  %v379_v11 = vstv %s437_s19 }
  0x4e   :  { %v154_v43 = vor.u32 %v153_v29, %v152_v40  ;;  %v157_v44 = vshll.u32 %v156_v42, 23  ;;  %v384_v29 = vstv %s438_s20 }
  0x50   :  { %v158_v45 = vor.u32 4788187, %v157_v44  ;;  %v161_v46 = vcvt.s32.f32 %v154_v43 }
  0x52   :  { %v159_v47 = vand.u32 2147483647, %v158_v45 }
  0x54   :  { %v162_v48 = vmul.f32 %v161_v46, %v159_v47  ;;  %v389_v46 = vstv %s439_s21 }
  0x56   :  { %v163_v49 = vxor.u32 2147483648, %v162_v48 }
  0x58   :  { %v164_v51 = vsel %vm43_vm12, %v163_v49, %v162_v48 }
  0x59   :  { %v167_v52 = vsel %vm42_vm13, %v550_v1, %v164_v51 }
  0x5a   :  { %v169_v53 = vmul.f32 %v167_v52, %v167_v52 }
  0x5c   :  { %v170_v55 = vmul.f32 -0.001358992, %v169_v53  ;;  %v177_v56 = vmul.f32 -0.00019511016, %v169_v53 }
  0x5e   :  { %v171_v58 = vadd.f32 0.041655596, %v170_v55  ;;  %v178_v59 = vadd.f32 0.008332121, %v177_v56 }
  0x60   :  { %v172_v61 = vmul.f32 %v171_v58, %v169_v53  ;;  %v179_v62 = vmul.f32 %v178_v59, %v169_v53  ;;  %v403_v58 = vstv %s442_s24 }
  0x62   :  { %v173_v63 = vadd.f32 -0.4999988, %v172_v61  ;;  %v180_v0 = vadd.f32 -0.16666654, %v179_v62  ;;  %v406_v61 = vlaneseq }
  0x64   :  { %v174_v4 = vmul.f32 %v173_v63, %v169_v53  ;;  %v181_v5 = vmul.f32 %v180_v0, %v169_v53  ;;  %vm408_vm5 = vcmp.lt.s32.totalorder %v406_v61, 256 }
  0x66   :  { %v175_v6 = vadd.f32 1.0, %v174_v4  ;;  %v182_v7 = vadd.f32 1.0, %v181_v5 }
  0x68   :  { %v183_v8 = vmul.f32 %v182_v7, %v167_v52  ;;  %v191_v9 = vxor.u32 2147483648, %v175_v6 }
  0x6a   :  { %v188_v10 = vxor.u32 2147483648, %v183_v8  ;;  %v192_v12 = vsel %vm190_vm14, %v191_v9, %v183_v8  ;;  %v347_v13 = vsel %vm345_vm15, %v191_v9, %v183_v8 }
  0x6c   :  { %v189_v14 = vsel %vm187_vm1, %v175_v6, %v188_v10  ;;  %v344_v15 = vsel %vm342_vm2, %v175_v6, %v188_v10 }
  0x6d   :  { %v193_v16 = vsel %vm186_vm0, %v189_v14, %v192_v12  ;;  %v348_v17 = vsel %vm341_vm3, %v344_v15, %v347_v13 }
  0x6e   :  { %v194_v18 = vsel %vm184_vm4, nan, %v193_v16  ;;  %v349_v19 = vsel %vm184_vm4, nan, %v348_v17 }
  0x6f   :  { %v350_v20 = vmul.f32 %v194_v18, %v194_v18  ;;  %v351_v21 = vmul.f32 %v349_v19, %v349_v19 }
  0x71   :  { %v352_v22 = vmul.f32 %v350_v20, %v194_v18  ;;  %v353_v23 = vmul.f32 %v351_v21, %v349_v19 }
  0x73   :  { %v354_v24 = vmul.f32 %v352_v22, %v194_v18  ;;  %v355_v25 = vmul.f32 %v353_v23, %v349_v19 }
  0x75   :  { %v356_v26 = vmul.f32 %v354_v24, %v194_v18  ;;  %v357_v27 = vmul.f32 %v355_v25, %v349_v19  ;;  %v383_v41 = vmul.f32 %v355_v25, %v354_v24 }
  0x77   :  { %v358_v1 = vmul.f32 %v356_v26, %v194_v18  ;;  %v359_v34 = vmul.f32 %v357_v27, %v349_v19  ;;  %v378_v37 = vmul.f32 %v356_v26, %v353_v23  ;;  %v388_v45 = vmul.f32 %v357_v27, %v352_v22 }
  0x78   :  { %v385_v48 = vmul.f32 %v384_v29, %v383_v41 }
  0x79   :  { %v360_v28 = vmul.f32 %v358_v1, %v194_v18  ;;  %v373_v30 = vmul.f32 %v358_v1, %v351_v21  ;;  %v361_v42 = vmul.f32 %v359_v34, %v349_v19  ;;  %v380_v44 = vmul.f32 %v379_v11, %v378_v37 }
  0x7a   :  { %v393_v49 = vmul.f32 %v359_v34, %v350_v20  ;;  %v390_v52 = vmul.f32 %v389_v46, %v388_v45 }
  0x7b   :  { %v362_v35 = vmul.f32 %v360_v28, %v194_v18  ;;  %v368_v36 = vmul.f32 %v360_v28, %v349_v19  ;;  %v375_v40 = vmul.f32 %v374_v33, %v373_v30  ;;  %v398_v53 = vmul.f32 %v361_v42, %v194_v18 }
  0x7c   :  { %v363_v55 = vmul.f32 %v361_v42, %v349_v19  ;;  %v395_v57 = vmul.f32 %v394_v50, %v393_v49 }
  0x7d   :  { %v366_v38 = vmul.f32 %v365_v31, %v362_v35  ;;  %v370_v39 = vmul.f32 %v369_v32, %v368_v36  ;;  %v400_v60 = vmul.f32 %v399_v54, %v398_v53 }
  0x7e   :  { %v404_v63 = vmul.f32 %v403_v58, %v363_v55 }
  0x7f   :  { %v371_v43 = vadd.f32 %v370_v39, %v366_v38 }
  0x81   :  { %v376_v47 = vadd.f32 %v375_v40, %v371_v43 }
  0x83   :  { %v381_v51 = vadd.f32 %v380_v44, %v376_v47 }
  0x85   :  { %v386_v56 = vadd.f32 %v385_v48, %v381_v51 }
  0x87   :  { %v391_v59 = vadd.f32 %v390_v52, %v386_v56 }
  0x89   :  { %v396_v62 = vadd.f32 %v395_v57, %v391_v59 }
  0x8b   :  { %v401_v0 = vadd.f32 %v400_v60, %v396_v62 }
  0x8d   :  { %v405_v2 = vadd.f32 %v404_v63, %v401_v0 }
  0x8f   :  { %410 = vst.msk [vmem:[#allocation7] sm:$0x3] %vm408_vm5, %v405_v2 }
  0x90   :  { %421 = dma.vmem_to_hbm [thread:$0]  %s417_s26, 32, %s419_s29, [#allocation4]  }
  0x91   :  { %517 = dma.done.wait [#allocation4], 32  }
  0x92   :  { %518 = vsyncadd [#allocation4], 4294967264 }
  0x93   :  { %426 = vsyncpa [#allocation3], 1 }
  0x94   :  { %427 = vsyncpa [#allocation4], 1 }
  0x95   :  { %428 = vsyncpa [#allocation5], 1 }

</bundles_post_ra>
